<compile_context>
chip_gen: v5e
topology: v5e:2x2
jax: 0.10.0
libtpu: 0.0.40
codegen_flags: <defaults>
</compile_context>

<pallas_src>
import math
from functools import partial

import jax
import jax.numpy as jnp
from jax.experimental import pallas as pl
from jax.experimental.pallas import tpu as pltpu


LANE = 128                       # padded feature width (all layer widths <= 128)
BLOCK_M = 128                    # activation rows per grid step
N_LAYERS = 4
W_ROWS = N_LAYERS * LANE         # 512: weight region of the slab
B_ROWS = N_LAYERS * BLOCK_M      # 512: bias region of the slab
SLAB_ROWS = W_ROWS + B_ROWS      # 1024


def _encoder_kernel(x_ref, p_ref, out_ref):
    """x_ref: (BLOCK_M, 128) activation tile (one sample per row),
    p_ref: (1024, 128) packed parameter slab (resident across grid steps),
    out_ref: (BLOCK_M, 128) output tile (lanes 0..1 = fcout result)."""
    f32 = jnp.float32
    h = x_ref[...]

    # Each weight tile is read at its use site so only one (128,128) tile
    # (16 vregs) is live at a time; each bias tile is already replicated to
    # (BLOCK_M, 128) -> plain elementwise add, no sublane broadcast.
    h = jnp.tanh(
        jnp.dot(h, p_ref[0 * LANE:1 * LANE, :], preferred_element_type=f32)
        + p_ref[W_ROWS + 0 * BLOCK_M:W_ROWS + 1 * BLOCK_M, :])
    h = jnp.tanh(
        jnp.dot(h, p_ref[1 * LANE:2 * LANE, :], preferred_element_type=f32)
        + p_ref[W_ROWS + 1 * BLOCK_M:W_ROWS + 2 * BLOCK_M, :])
    h = jnp.tanh(
        jnp.dot(h, p_ref[2 * LANE:3 * LANE, :], preferred_element_type=f32)
        + p_ref[W_ROWS + 2 * BLOCK_M:W_ROWS + 3 * BLOCK_M, :])
    out_ref[...] = (
        jnp.dot(h, p_ref[3 * LANE:4 * LANE, :], preferred_element_type=f32)
        + p_ref[W_ROWS + 3 * BLOCK_M:W_ROWS + 4 * BLOCK_M, :])


def pack_params(params):
    """params: list of 4 (W, b) pairs, W shaped (in, out), b shaped (out,).
    Returns one (1024, 128) f32 slab (single DMA into the kernel)."""
    assert len(params) == N_LAYERS
    w_blocks, b_blocks = [], []
    for (w, b) in params:
        fin, fout = w.shape
        assert b.shape == (fout,), (
            "bias must match W's out dim -- W must be stored (in, out); "
            "transpose raw PyTorch (out, in) weights before packing")
        assert fin <= LANE and fout <= LANE, "layer wider than 128 not supported"
        wp = jnp.zeros((LANE, LANE), jnp.float32).at[:fin, :fout].set(
            w.astype(jnp.float32))
        w_blocks.append(wp)
        bp = jnp.zeros((BLOCK_M, LANE), jnp.float32).at[:, :fout].set(
            jnp.broadcast_to(b.astype(jnp.float32), (BLOCK_M, fout)))
        b_blocks.append(bp)
    return jnp.concatenate(w_blocks + b_blocks, axis=0)   # (1024, 128)


def _forward_padded(x_pad, packed_params):
    """x_pad: (B_padded, 128) with B_padded a multiple of BLOCK_M."""
    bp = x_pad.shape[0]
    assert bp % BLOCK_M == 0
    return pl.pallas_call(
        _encoder_kernel,
        out_shape=jax.ShapeDtypeStruct((bp, LANE), jnp.float32),
        grid=(bp // BLOCK_M,),
        in_specs=[
            pl.BlockSpec((BLOCK_M, LANE), lambda i: (i, 0)),
            # constant index_map -> param slab DMA'd once, VMEM-resident
            pl.BlockSpec((SLAB_ROWS, LANE), lambda i: (0, 0)),
        ],
        out_specs=pl.BlockSpec((BLOCK_M, LANE), lambda i: (i, 0)),
        compiler_params=pltpu.CompilerParams(
            dimension_semantics=("parallel",)),
    )(x_pad, packed_params)


@partial(jax.jit, static_argnames=("out_features",))
def pendulum_encoder_multistep(x1, x2, packed_params, out_features=2):
    """Exact PyTorch forward semantics: single sample x1, x2 of shape
    (prediction_horizon+1, block_length).  Returns shape (out_features,)."""
    x = jnp.concatenate([x1, x2], axis=0).reshape(-1).astype(jnp.float32)
    d = x.shape[0]
    assert d <= LANE, "input wider than 128 not supported"
    x_pad = jnp.zeros((BLOCK_M, LANE), jnp.float32).at[0, :d].set(x)
    out = _forward_padded(x_pad, packed_params)
    return out[0, :out_features]


@partial(jax.jit, static_argnames=("out_features",))
def pendulum_encoder_multistep_batched(x1, x2, packed_params, out_features=2):
    """Batched forward: x1, x2 shaped (B, prediction_horizon+1, block_length).
    Per-sample result identical to the single-sample PyTorch forward."""
    B = x1.shape[0]
    x = jnp.concatenate([x1, x2], axis=1).reshape(B, -1).astype(jnp.float32)
    d = x.shape[1]
    assert d <= LANE, "input wider than 128 not supported"
    bp = ((B + BLOCK_M - 1) // BLOCK_M) * BLOCK_M
    x_pad = jnp.zeros((bp, LANE), jnp.float32).at[:B, :d].set(x)
    out = _forward_padded(x_pad, packed_params)
    return out[:B, :out_features]


def _init_linear(key, fan_in, fan_out):
    """PyTorch-style Linear init (uniform +/- 1/sqrt(fan_in)); W stored (in, out)."""
    kw, kb = jax.random.split(key)
    bound = 1.0 / math.sqrt(fan_in)
    w = jax.random.uniform(kw, (fan_in, fan_out), jnp.float32, -bound, bound)
    b = jax.random.uniform(kb, (fan_out,), jnp.float32, -bound, bound)
    return w, b


def _reference_single(x1, x2, params):
    x = jnp.concatenate([x1, x2], axis=0).reshape(-1).astype(jnp.float32)
    (w1, b1), (w2, b2), (w3, b3), (w4, b4) = params
    h = jnp.tanh(x @ w1 + b1)
    h = jnp.tanh(h @ w2 + b2)
    h = jnp.tanh(h @ w3 + b3)
    return h @ w4 + b4


def _reference_batched(x1, x2, params):
    B = x1.shape[0]
    x = jnp.concatenate([x1, x2], axis=1).reshape(B, -1).astype(jnp.float32)
    (w1, b1), (w2, b2), (w3, b3), (w4, b4) = params
    h = jnp.tanh(x @ w1 + b1)
    h = jnp.tanh(h @ w2 + b2)
    h = jnp.tanh(h @ w3 + b3)
    return h @ w4 + b4


if __name__ == "__main__":
    prediction_horizon = 3
    block_length = 4
    D = 2 * (prediction_horizon + 1) * block_length      # = 32

    key = jax.random.PRNGKey(0)
    keys = jax.random.split(key, 8)

    # encoder layers: D -> D-10 -> D-20 -> D-30 -> 2
    fc1 = _init_linear(keys[0], D, D - 10)
    fc2 = _init_linear(keys[1], D - 10, D - 20)
    fc3 = _init_linear(keys[2], D - 20, D - 30)
    fcout = _init_linear(keys[3], D - 30, 2)
    params = [fc1, fc2, fc3, fcout]
    packed = pack_params(params)

    # --- single-sample call, exact PyTorch forward semantics ---
    x1 = jax.random.normal(keys[4], (prediction_horizon + 1, block_length),
                           dtype=jnp.float32)
    x2 = jax.random.normal(keys[5], (prediction_horizon + 1, block_length),
                           dtype=jnp.float32)
    out = pendulum_encoder_multistep(x1, x2, packed)
    out = jax.block_until_ready(out)
    assert out.shape == (2,)
    ref = _reference_single(x1, x2, params)
    assert jnp.allclose(out, ref, atol=1e-5, rtol=1e-5), (out, ref)

    # --- batched call (multiple grid steps, resident params) ---
    B = 200                                               # pads to 256 -> 2 grid steps
    xb1 = jax.random.normal(keys[6], (B, prediction_horizon + 1, block_length),
                            dtype=jnp.float32)
    xb2 = jax.random.normal(keys[7], (B, prediction_horizon + 1, block_length),
                            dtype=jnp.float32)
    outb = pendulum_encoder_multistep_batched(xb1, xb2, packed)
    outb = jax.block_until_ready(outb)
    assert outb.shape == (B, 2)
    refb = _reference_batched(xb1, xb2, params)
    assert jnp.allclose(outb, refb, atol=1e-5, rtol=1e-5)

    print("KERNEL_OK")
</pallas_src>

<mosaic_0001>
module attributes {stable_mosaic.version = 11 : i64} {
  func.func @_encoder_kernel(%arg0: i32, %arg1: memref<128x128xf32, #tpu.memory_space<vmem>>, %arg2: memref<1024x128xf32, #tpu.memory_space<vmem>>, %arg3: memref<128x128xf32, #tpu.memory_space<vmem>>) attributes {dimension_semantics = [#tpu.dimension_semantics<parallel>], iteration_bounds = array<i64: 1>, scalar_prefetch = 0 : i64, scratch_operands = 0 : i64, tpu.core_type = #tpu.core_type<tc>, window_params = [{transform_indices = @transform_0, window_bounds = array<i64: 128, 128>}, {pipeline_mode = #tpu.pipeline_mode<synchronous>, transform_indices = @transform_1, window_bounds = array<i64: 1024, 128>}, {transform_indices = @transform_2, window_bounds = array<i64: 128, 128>}]} {
    %c0 = arith.constant 0 : index
    %c0_0 = arith.constant 0 : index
    %0 = vector.load %arg1[%c0, %c0_0] : memref<128x128xf32, #tpu.memory_space<vmem>>, vector<128x128xf32>
    %c0_1 = arith.constant 0 : index
    %c0_2 = arith.constant 0 : index
    %1 = vector.load %arg2[%c0_1, %c0_2] : memref<1024x128xf32, #tpu.memory_space<vmem>>, vector<128x128xf32>
    %cst = arith.constant dense<0.000000e+00> : vector<128x128xf32>
    %2 = tpu.matmul %0, %1, %cst {dimension_numbers = #tpu.dot_dimension_numbers<[1], [0], [0], [1], [0, 0, 1, 1], [], []>} : vector<128x128xf32>, vector<128x128xf32>, vector<128x128xf32> -> vector<128x128xf32>
    %c512 = arith.constant 512 : index
    %c0_3 = arith.constant 0 : index
    %3 = vector.load %arg2[%c512, %c0_3] : memref<1024x128xf32, #tpu.memory_space<vmem>>, vector<128x128xf32>
    %4 = arith.addf %2, %3 : vector<128x128xf32>
    %5 = math.tanh %4 : vector<128x128xf32>
    %c128 = arith.constant 128 : index
    %c0_4 = arith.constant 0 : index
    %6 = vector.load %arg2[%c128, %c0_4] : memref<1024x128xf32, #tpu.memory_space<vmem>>, vector<128x128xf32>
    %cst_5 = arith.constant dense<0.000000e+00> : vector<128x128xf32>
    %7 = tpu.matmul %5, %6, %cst_5 {dimension_numbers = #tpu.dot_dimension_numbers<[1], [0], [0], [1], [0, 0, 1, 1], [], []>} : vector<128x128xf32>, vector<128x128xf32>, vector<128x128xf32> -> vector<128x128xf32>
    %c640 = arith.constant 640 : index
    %c0_6 = arith.constant 0 : index
    %8 = vector.load %arg2[%c640, %c0_6] : memref<1024x128xf32, #tpu.memory_space<vmem>>, vector<128x128xf32>
    %9 = arith.addf %7, %8 : vector<128x128xf32>
    %10 = math.tanh %9 : vector<128x128xf32>
    %c256 = arith.constant 256 : index
    %c0_7 = arith.constant 0 : index
    %11 = vector.load %arg2[%c256, %c0_7] : memref<1024x128xf32, #tpu.memory_space<vmem>>, vector<128x128xf32>
    %cst_8 = arith.constant dense<0.000000e+00> : vector<128x128xf32>
    %12 = tpu.matmul %10, %11, %cst_8 {dimension_numbers = #tpu.dot_dimension_numbers<[1], [0], [0], [1], [0, 0, 1, 1], [], []>} : vector<128x128xf32>, vector<128x128xf32>, vector<128x128xf32> -> vector<128x128xf32>
    %c768 = arith.constant 768 : index
    %c0_9 = arith.constant 0 : index
    %13 = vector.load %arg2[%c768, %c0_9] : memref<1024x128xf32, #tpu.memory_space<vmem>>, vector<128x128xf32>
    %14 = arith.addf %12, %13 : vector<128x128xf32>
    %15 = math.tanh %14 : vector<128x128xf32>
    %c384 = arith.constant 384 : index
    %c0_10 = arith.constant 0 : index
    %16 = vector.load %arg2[%c384, %c0_10] : memref<1024x128xf32, #tpu.memory_space<vmem>>, vector<128x128xf32>
    %cst_11 = arith.constant dense<0.000000e+00> : vector<128x128xf32>
    %17 = tpu.matmul %15, %16, %cst_11 {dimension_numbers = #tpu.dot_dimension_numbers<[1], [0], [0], [1], [0, 0, 1, 1], [], []>} : vector<128x128xf32>, vector<128x128xf32>, vector<128x128xf32> -> vector<128x128xf32>
    %c896 = arith.constant 896 : index
    %c0_12 = arith.constant 0 : index
    %18 = vector.load %arg2[%c896, %c0_12] : memref<1024x128xf32, #tpu.memory_space<vmem>>, vector<128x128xf32>
    %19 = arith.addf %17, %18 : vector<128x128xf32>
    %c0_13 = arith.constant 0 : index
    %c0_14 = arith.constant 0 : index
    %20 = vector.load %arg3[%c0_13, %c0_14] : memref<128x128xf32, #tpu.memory_space<vmem>>, vector<128x128xf32>
    tpu.vector_store %arg3[%c0_13, %c0_14], %19 {strides = array<i32>} : memref<128x128xf32, #tpu.memory_space<vmem>>, vector<128x128xf32>,
    return
  }
  func.func @transform_0(%arg0: i32) -> (i32, i32) {
    %c0_i32 = arith.constant 0 : i32
    %c0_i32_0 = arith.constant 0 : i32
    return %arg0, %c0_i32 : i32, i32
  }
  func.func @transform_1(%arg0: i32) -> (i32, i32) {
    %c0_i32 = arith.constant 0 : i32
    %c0_i32_0 = arith.constant 0 : i32
    %c0_i32_1 = arith.constant 0 : i32
    return %c0_i32, %c0_i32_0 : i32, i32
  }
  func.func @transform_2(%arg0: i32) -> (i32, i32) {
    %c0_i32 = arith.constant 0 : i32
    %c0_i32_0 = arith.constant 0 : i32
    return %arg0, %c0_i32 : i32, i32
  }
}

</mosaic_0001>

<bundles_post_ra>
// kernel: pendulum_encoder_multistep.1
= control target key start
LH: loop header
LB: loop body
LE: loop exit
PB: predicated region body
PF: predicated region fallthrough
CT: control target
= control target key end

     0   :  { %7 = vsyncpa [#allocation3], 0  ;;  %s625_s12 = smov [#allocation2]   ;;  %s626_s14 = smov 128   ;;  %s742_s0 = inlined_call_operand.vmem [shape: f32[128,128], index: 0, kind: input, shape index: {}]   ;;  %s743_s1 = inlined_call_operand.hbm [shape: f32[1024,128], index: 1, kind: input, shape index: {}]   ;;  %s744_s2 = inlined_call_operand.vmem [shape: f32[128,128], index: 2, kind: output, shape index: {}]  }
   0x1   :  { %s14_s11 = sshll.u32 %s743_s1, 4  ;;  %s16_s13 = sshll.u32 %s625_s12, 4  ;;  %s15_s11 = int_to_ptr.hbm [resolvable:$true] %s14_s11  ;;  %s17_s13 = int_to_ptr.vmem [resolvable:$true] %s16_s13 }
   0x2   :  { %s627_s15 = smov 8  }
   0x3   :  { %22 = dma.hbm_to_vmem [thread:$0]  %s15_s11, 16384, %s17_s13, [#allocation3], %s626_s14, %s626_s14, %s627_s15  }
   0x4   :  { %623 = dma.done.wait [#allocation3], 16384  }
   0x5   :  { %624 = vsyncadd [#allocation3], 4294950912  ;;  %v58_v0 = vld [vmem:[#allocation2 + $0x78] sm:$0xff]  ;;  %v57_v1 = vld [vmem:[#allocation2 + $0x70] sm:$0xff] }
   0x6   :  { %75 = vmatpush.msra.mxu0 %v58_v0  ;;  %v56_v2 = vld [vmem:[#allocation2 + $0x68] sm:$0xff]  ;;  %v55_v3 = vld [vmem:[#allocation2 + $0x60] sm:$0xff]  ;;  %v54_v4 = vld [vmem:[#allocation2 + $0x58] sm:$0xff] }
   0x7   :  { %v53_v5 = vld [vmem:[#allocation2 + $0x50] sm:$0xff]  ;;  %v52_v6 = vld [vmem:[#allocation2 + $0x48] sm:$0xff]  ;;  %v51_v7 = vld [vmem:[#allocation2 + $0x40] sm:$0xff] }
   0x8   :  { %76 = vmatpush.msra.mxu0 %v57_v1  ;;  %v50_v8 = vld [vmem:[#allocation2 + $0x38] sm:$0xff]  ;;  %v49_v9 = vld [vmem:[#allocation2 + $0x30] sm:$0xff]  ;;  %v48_v10 = vld [vmem:[#allocation2 + $0x28] sm:$0xff] }
   0x9   :  { %v47_v11 = vld [vmem:[#allocation2 + $0x20] sm:$0xff]  ;;  %v46_v12 = vld [vmem:[#allocation2 + $0x18] sm:$0xff]  ;;  %v45_v13 = vld [vmem:[#allocation2 + $0x10] sm:$0xff] }
   0xa   :  { %77 = vmatpush.msra.mxu0 %v56_v2  ;;  %v44_v14 = vld [vmem:[#allocation2 + $0x8] sm:$0xff]  ;;  %v43_v15 = vld [vmem:[#allocation2] sm:$0xff]  ;;  %v29_v18 = vld [vmem:[%s742_s0 + $0x10] sm:$0xff] }
   0xb   :  { %v27_v16 = vld [vmem:[%s742_s0] sm:$0xff]  ;;  %v28_v17 = vld [vmem:[%s742_s0 + $0x8] sm:$0xff]  ;;  %v30_v19 = vld [vmem:[%s742_s0 + $0x18] sm:$0xff] }
   0xc   :  { %78 = vmatpush.msra.mxu0 %v55_v3  ;;  %v31_v20 = vld [vmem:[%s742_s0 + $0x20] sm:$0xff]  ;;  %v32_v21 = vld [vmem:[%s742_s0 + $0x28] sm:$0xff]  ;;  %v33_v22 = vld [vmem:[%s742_s0 + $0x30] sm:$0xff] }
   0xd   :  { %v34_v23 = vld [vmem:[%s742_s0 + $0x38] sm:$0xff]  ;;  %v35_v24 = vld [vmem:[%s742_s0 + $0x40] sm:$0xff]  ;;  %v36_v25 = vld [vmem:[%s742_s0 + $0x48] sm:$0xff] }
   0xe   :  { %79 = vmatpush.msra.mxu0 %v54_v4  ;;  %v171_v26 = vld [vmem:[#allocation2 + $0xf8] sm:$0xff]  ;;  %v170_v27 = vld [vmem:[#allocation2 + $0xf0] sm:$0xff]  ;;  %v169_v28 = vld [vmem:[#allocation2 + $0xe8] sm:$0xff] }
   0xf   :  { %188 = vmatpush.msra.mxu1 %v171_v26  ;;  %v168_v29 = vld [vmem:[#allocation2 + $0xe0] sm:$0xff]  ;;  %v37_v30 = vld [vmem:[%s742_s0 + $0x50] sm:$0xff]  ;;  %v167_v31 = vld [vmem:[#allocation2 + $0xd8] sm:$0xff] }
  0x10   :  { %80 = vmatpush.msra.mxu0 %v53_v5  ;;  %v166_v32 = vld [vmem:[#allocation2 + $0xd0] sm:$0xff]  ;;  %v165_v33 = vld [vmem:[#allocation2 + $0xc8] sm:$0xff]  ;;  %v164_v34 = vld [vmem:[#allocation2 + $0xc0] sm:$0xff] }
  0x11   :  { %189 = vmatpush.msra.mxu1 %v170_v27  ;;  %v38_v35 = vld [vmem:[%s742_s0 + $0x58] sm:$0xff]  ;;  %v162_v37 = vld [vmem:[#allocation2 + $0xb0] sm:$0xff]  ;;  %v161_v38 = vld [vmem:[#allocation2 + $0xa8] sm:$0xff] }
  0x12   :  { %81 = vmatpush.msra.mxu0 %v52_v6  ;;  %v163_v36 = vld [vmem:[#allocation2 + $0xb8] sm:$0xff]  ;;  %v39_v39 = vld [vmem:[%s742_s0 + $0x60] sm:$0xff]  ;;  %v158_v42 = vld [vmem:[#allocation2 + $0x90] sm:$0xff] }
  0x13   :  { %190 = vmatpush.msra.mxu1 %v169_v28  ;;  %v160_v40 = vld [vmem:[#allocation2 + $0xa0] sm:$0xff]  ;;  %v159_v41 = vld [vmem:[#allocation2 + $0x98] sm:$0xff]  ;;  %v157_v43 = vld [vmem:[#allocation2 + $0x88] sm:$0xff] }
  0x14   :  { %82 = vmatpush.msra.mxu0 %v51_v7  ;;  %v40_v44 = vld [vmem:[%s742_s0 + $0x68] sm:$0xff]  ;;  %v156_v45 = vld [vmem:[#allocation2 + $0x80] sm:$0xff]  ;;  %v41_v46 = vld [vmem:[%s742_s0 + $0x70] sm:$0xff] }
  0x15   :  { %191 = vmatpush.msra.mxu1 %v168_v29  ;;  %v42_v47 = vld [vmem:[%s742_s0 + $0x78] sm:$0xff]  ;;  %v59_v48 = vld [vmem:[#allocation2 + $0x200] sm:$0xff]  ;;  %v60_v51 = vld [vmem:[#allocation2 + $0x208] sm:$0xff] }
  0x16   :  { %83 = vmatpush.msra.mxu0 %v50_v8  ;;  %v61_v55 = vld [vmem:[#allocation2 + $0x210] sm:$0xff]  ;;  %v62_v59 = vld [vmem:[#allocation2 + $0x218] sm:$0xff]  ;;  %v63_v63 = vld [vmem:[#allocation2 + $0x220] sm:$0xff] }
  0x17   :  { %192 = vmatpush.msra.mxu1 %v167_v31  ;;  %v64_v3 = vld [vmem:[#allocation2 + $0x228] sm:$0xff]  ;;  %v65_v7 = vld [vmem:[#allocation2 + $0x230] sm:$0xff]  ;;  %v284_v27 = vld [vmem:[#allocation2 + $0x178] sm:$0xff] }
  0x18   :  { %84 = vmatpush.msra.mxu0 %v49_v9  ;;  %301 = vmatpush.msra.mxu2 %v284_v27  ;;  %v283_v28 = vld [vmem:[#allocation2 + $0x170] sm:$0xff]  ;;  %v282_v29 = vld [vmem:[#allocation2 + $0x168] sm:$0xff]  ;;  %v281_v31 = vld [vmem:[#allocation2 + $0x160] sm:$0xff] }
  0x19   :  { %193 = vmatpush.msra.mxu1 %v166_v32  ;;  %v179_v27 = vld [vmem:[#allocation2 + $0x2b8] sm:$0xff] }
  0x1a   :  { %85 = vmatpush.msra.mxu0 %v48_v10  ;;  %302 = vmatpush.msra.mxu2 %v283_v28 }
  0x1b   :  { %194 = vmatpush.msra.mxu1 %v165_v33 }
  0x1c   :  { %86 = vmatpush.msra.mxu0 %v47_v11  ;;  %v66_v11 = vld [vmem:[#allocation2 + $0x238] sm:$0xff]  ;;  %303 = vmatpush.msra.mxu2 %v282_v29 }
  0x1d   :  { %195 = vmatpush.msra.mxu1 %v164_v34 }
  0x1e   :  { %87 = vmatpush.msra.mxu0 %v46_v12  ;;  %304 = vmatpush.msra.mxu2 %v281_v31  ;;  %v180_v31 = vld [vmem:[#allocation2 + $0x2c0] sm:$0xff] }
  0x1f   :  { %196 = vmatpush.msra.mxu1 %v163_v36  ;;  %v279_v36 = vld [vmem:[#allocation2 + $0x150] sm:$0xff] }
  0x20   :  { %88 = vmatpush.msra.mxu0 %v45_v13 }
  0x21   :  { %197 = vmatpush.msra.mxu1 %v162_v37  ;;  %v278_v37 = vld [vmem:[#allocation2 + $0x148] sm:$0xff] }
  0x22   :  { %89 = vmatpush.msra.mxu0 %v44_v14 }
  0x23   :  { %198 = vmatpush.msra.mxu1 %v161_v38  ;;  %v277_v38 = vld [vmem:[#allocation2 + $0x140] sm:$0xff] }
  0x24   :  { %90 = vmatpush.msra.mxu0 %v43_v15  ;;  %v67_v15 = vld [vmem:[#allocation2 + $0x240] sm:$0xff] }
  0x25   :  { %91 = vmatmul.f32.vlgmr.msra.gmra.mxu0 %v27_v16  ;;  %199 = vmatpush.msra.mxu1 %v160_v40 }
  0x27   :  { %200 = vmatpush.msra.mxu1 %v159_v41 }
  0x29   :  { %201 = vmatpush.msra.mxu1 %v158_v42 }
  0x2b   :  { %202 = vmatpush.msra.mxu1 %v157_v43  ;;  %v276_v43 = vld [vmem:[#allocation2 + $0x138] sm:$0xff] }
  0x2d   :  { %94 = vmatmul.f32.gmra.mxu0 %v28_v17  ;;  %203 = vmatpush.msra.mxu1 %v156_v45  ;;  %v274_v45 = vld [vmem:[#allocation2 + $0x128] sm:$0xff] }
  0x35   :  { %97 = vmatmul.f32.gmra.mxu0 %v29_v18 }
  0x3d   :  { %100 = vmatmul.f32.gmra.mxu0 %v30_v19  ;;  %v68_v19 = vld [vmem:[#allocation2 + $0x248] sm:$0xff] }
  0x45   :  { %103 = vmatmul.f32.gmra.mxu0 %v31_v20 }
  0x4d   :  { %106 = vmatmul.f32.gmra.mxu0 %v32_v21 }
  0x55   :  { %109 = vmatmul.f32.gmra.mxu0 %v33_v22 }
  0x5d   :  { %112 = vmatmul.f32.gmra.mxu0 %v34_v23  ;;  %v69_v23 = vld [vmem:[#allocation2 + $0x250] sm:$0xff] }
  0x65   :  { %115 = vmatmul.f32.gmra.mxu0 %v35_v24 }
  0x6d   :  { %118 = vmatmul.f32.gmra.mxu0 %v36_v25 }
  0x75   :  { %121 = vmatmul.f32.gmra.mxu0 %v37_v30  ;;  %v70_v30 = vld [vmem:[#allocation2 + $0x258] sm:$0xff] }
  0x7d   :  { %124 = vmatmul.f32.gmra.mxu0 %v38_v35  ;;  %v280_v35 = vld [vmem:[#allocation2 + $0x158] sm:$0xff] }
  0x7e   :  { %305 = vmatpush.msra.mxu2 %v280_v35  ;;  %v181_v35 = vld [vmem:[#allocation2 + $0x2c8] sm:$0xff] }
  0x80   :  { %306 = vmatpush.msra.mxu2 %v279_v36 }
  0x82   :  { %307 = vmatpush.msra.mxu2 %v278_v37 }
  0x84   :  { %308 = vmatpush.msra.mxu2 %v277_v38 }
  0x85   :  { %127 = vmatmul.f32.gmra.mxu0 %v39_v39  ;;  %v71_v39 = vld [vmem:[#allocation2 + $0x260] sm:$0xff] }
  0x86   :  { %309 = vmatpush.msra.mxu2 %v276_v43  ;;  %v183_v43 = vld [vmem:[#allocation2 + $0x2d8] sm:$0xff] }
  0x8d   :  { %130 = vmatmul.f32.gmra.mxu0 %v40_v44  ;;  %v275_v44 = vld [vmem:[#allocation2 + $0x130] sm:$0xff] }
  0x8e   :  { %310 = vmatpush.msra.mxu2 %v275_v44  ;;  %v397_v44 = vld [vmem:[#allocation2 + $0x1f8] sm:$0xff] }
  0x8f   :  { %414 = vmatpush.msra.mxu3 %v397_v44 }
  0x90   :  { %311 = vmatpush.msra.mxu2 %v274_v45 }
  0x95   :  { %133 = vmatmul.f32.gmra.mxu0 %v41_v46  ;;  %v72_v46 = vld [vmem:[#allocation2 + $0x268] sm:$0xff] }
  0x9d   :  { %136 = vmatmul.f32.gmra.mxu0 %v42_v47  ;;  %v273_v47 = vld [vmem:[#allocation2 + $0x120] sm:$0xff] }
  0x9e   :  { %312 = vmatpush.msra.mxu2 %v273_v47 }
  0xa2   :  { %v92_v49 = vpop.f32.mrf.mxu0 }
  0xa3   :  { %v93_v50 = vadd.f32 %v92_v49, %v59_v48 }
  0xa5   :  { %503 = vtanh.f32 %v93_v50 }
  0xaa   :  { %v95_v52 = vpop.f32.mrf.mxu0 }
  0xab   :  { %v504_v53 = vpop.eup %503  ;;  %v96_v54 = vadd.f32 %v95_v52, %v60_v51  ;;  %v272_v51 = vld [vmem:[#allocation2 + $0x118] sm:$0xff]  ;;  %v271_v52 = vld [vmem:[#allocation2 + $0x110] sm:$0xff] }
  0xac   :  { %204 = vmatmul.f32.vlgmr.msra.gmra.mxu1 %v504_v53  ;;  %313 = vmatpush.msra.mxu2 %v272_v51  ;;  %v270_v53 = vld [vmem:[#allocation2 + $0x108] sm:$0xff]  ;;  %v393_v51 = vld [vmem:[#allocation2 + $0x1d8] sm:$0xff] }
  0xad   :  { %505 = vtanh.f32 %v96_v54  ;;  %v73_v54 = vld [vmem:[#allocation2 + $0x270] sm:$0xff] }
  0xae   :  { %314 = vmatpush.msra.mxu2 %v271_v52  ;;  %v184_v52 = vld [vmem:[#allocation2 + $0x2e0] sm:$0xff] }
  0xb0   :  { %315 = vmatpush.msra.mxu2 %v270_v53 }
  0xb2   :  { %v98_v56 = vpop.f32.mrf.mxu0 }
  0xb3   :  { %v506_v57 = vpop.eup %505  ;;  %v99_v58 = vadd.f32 %v98_v56, %v61_v55  ;;  %v269_v55 = vld [vmem:[#allocation2 + $0x100] sm:$0xff] }
  0xb4   :  { %207 = vmatmul.f32.gmra.mxu1 %v506_v57  ;;  %316 = vmatpush.msra.mxu2 %v269_v55 }
  0xb5   :  { %507 = vtanh.f32 %v99_v58 }
  0xba   :  { %v101_v60 = vpop.f32.mrf.mxu0 }
  0xbb   :  { %v508_v61 = vpop.eup %507  ;;  %v102_v62 = vadd.f32 %v101_v60, %v62_v59  ;;  %v74_v59 = vld [vmem:[#allocation2 + $0x278] sm:$0xff] }
  0xbc   :  { %210 = vmatmul.f32.gmra.mxu1 %v508_v61 }
  0xbd   :  { %509 = vtanh.f32 %v102_v62 }
  0xc2   :  { %v104_v0 = vpop.f32.mrf.mxu0 }
  0xc3   :  { %v510_v1 = vpop.eup %509  ;;  %v105_v2 = vadd.f32 %v104_v0, %v63_v63  ;;  %v172_v0 = vld [vmem:[#allocation2 + $0x280] sm:$0xff] }
  0xc4   :  { %213 = vmatmul.f32.gmra.mxu1 %v510_v1 }
  0xc5   :  { %511 = vtanh.f32 %v105_v2 }
  0xca   :  { %v107_v4 = vpop.f32.mrf.mxu0 }
  0xcb   :  { %v512_v5 = vpop.eup %511  ;;  %v108_v6 = vadd.f32 %v107_v4, %v64_v3  ;;  %v173_v3 = vld [vmem:[#allocation2 + $0x288] sm:$0xff] }
  0xcc   :  { %216 = vmatmul.f32.gmra.mxu1 %v512_v5 }
  0xcd   :  { %513 = vtanh.f32 %v108_v6 }
  0xd2   :  { %v110_v8 = vpop.f32.mrf.mxu0 }
  0xd3   :  { %v514_v9 = vpop.eup %513  ;;  %v111_v10 = vadd.f32 %v110_v8, %v65_v7  ;;  %v174_v7 = vld [vmem:[#allocation2 + $0x290] sm:$0xff] }
  0xd4   :  { %219 = vmatmul.f32.gmra.mxu1 %v514_v9 }
  0xd5   :  { %515 = vtanh.f32 %v111_v10 }
  0xda   :  { %v113_v12 = vpop.f32.mrf.mxu0 }
  0xdb   :  { %v516_v13 = vpop.eup %515  ;;  %v114_v14 = vadd.f32 %v113_v12, %v66_v11  ;;  %v175_v11 = vld [vmem:[#allocation2 + $0x298] sm:$0xff] }
  0xdc   :  { %222 = vmatmul.f32.gmra.mxu1 %v516_v13 }
  0xdd   :  { %517 = vtanh.f32 %v114_v14 }
  0xe2   :  { %v116_v16 = vpop.f32.mrf.mxu0 }
  0xe3   :  { %v518_v17 = vpop.eup %517  ;;  %v117_v18 = vadd.f32 %v116_v16, %v67_v15  ;;  %v176_v15 = vld [vmem:[#allocation2 + $0x2a0] sm:$0xff] }
  0xe4   :  { %225 = vmatmul.f32.gmra.mxu1 %v518_v17 }
  0xe5   :  { %519 = vtanh.f32 %v117_v18 }
  0xea   :  { %v119_v20 = vpop.f32.mrf.mxu0 }
  0xeb   :  { %v520_v21 = vpop.eup %519  ;;  %v120_v22 = vadd.f32 %v119_v20, %v68_v19  ;;  %v177_v19 = vld [vmem:[#allocation2 + $0x2a8] sm:$0xff] }
  0xec   :  { %228 = vmatmul.f32.gmra.mxu1 %v520_v21 }
  0xed   :  { %521 = vtanh.f32 %v120_v22 }
  0xf2   :  { %v122_v24 = vpop.f32.mrf.mxu0 }
  0xf3   :  { %v522_v25 = vpop.eup %521  ;;  %v123_v26 = vadd.f32 %v122_v24, %v69_v23  ;;  %v178_v23 = vld [vmem:[#allocation2 + $0x2b0] sm:$0xff] }
  0xf4   :  { %231 = vmatmul.f32.gmra.mxu1 %v522_v25 }
  0xf5   :  { %523 = vtanh.f32 %v123_v26 }
  0xfa   :  { %v125_v32 = vpop.f32.mrf.mxu0 }
  0xfb   :  { %v524_v33 = vpop.eup %523  ;;  %v126_v34 = vadd.f32 %v125_v32, %v70_v30 }
  0xfc   :  { %234 = vmatmul.f32.gmra.mxu1 %v524_v33 }
  0xfd   :  { %525 = vtanh.f32 %v126_v34 }
 0x102   :  { %v128_v40 = vpop.f32.mrf.mxu0 }
 0x103   :  { %v526_v41 = vpop.eup %525  ;;  %v129_v42 = vadd.f32 %v128_v40, %v71_v39  ;;  %v182_v39 = vld [vmem:[#allocation2 + $0x2d0] sm:$0xff] }
 0x104   :  { %237 = vmatmul.f32.gmra.mxu1 %v526_v41 }
 0x105   :  { %527 = vtanh.f32 %v129_v42 }
 0x10a   :  { %v131_v48 = vpop.f32.mrf.mxu0 }
 0x10b   :  { %v528_v49 = vpop.eup %527  ;;  %v132_v50 = vadd.f32 %v131_v48, %v72_v46  ;;  %v396_v48 = vld [vmem:[#allocation2 + $0x1f0] sm:$0xff] }
 0x10c   :  { %240 = vmatmul.f32.gmra.mxu1 %v528_v49  ;;  %415 = vmatpush.msra.mxu3 %v396_v48  ;;  %v395_v49 = vld [vmem:[#allocation2 + $0x1e8] sm:$0xff] }
 0x10d   :  { %529 = vtanh.f32 %v132_v50  ;;  %v394_v50 = vld [vmem:[#allocation2 + $0x1e0] sm:$0xff] }
 0x10e   :  { %416 = vmatpush.msra.mxu3 %v395_v49 }
 0x110   :  { %417 = vmatpush.msra.mxu3 %v394_v50 }
 0x112   :  { %v134_v56 = vpop.f32.mrf.mxu0  ;;  %418 = vmatpush.msra.mxu3 %v393_v51  ;;  %v294_v51 = vld [vmem:[#allocation2 + $0x348] sm:$0xff] }
 0x113   :  { %v530_v57 = vpop.eup %529  ;;  %v135_v58 = vadd.f32 %v134_v56, %v73_v54  ;;  %v392_v56 = vld [vmem:[#allocation2 + $0x1d0] sm:$0xff] }
 0x114   :  { %243 = vmatmul.f32.gmra.mxu1 %v530_v57  ;;  %419 = vmatpush.msra.mxu3 %v392_v56  ;;  %v391_v57 = vld [vmem:[#allocation2 + $0x1c8] sm:$0xff] }
 0x115   :  { %531 = vtanh.f32 %v135_v58  ;;  %v390_v58 = vld [vmem:[#allocation2 + $0x1c0] sm:$0xff] }
 0x116   :  { %420 = vmatpush.msra.mxu3 %v391_v57 }
 0x118   :  { %421 = vmatpush.msra.mxu3 %v390_v58 }
 0x11a   :  { %v137_v60 = vpop.f32.mrf.mxu0 }
 0x11b   :  { %v532_v61 = vpop.eup %531  ;;  %v138_v62 = vadd.f32 %v137_v60, %v74_v59  ;;  %v389_v59 = vld [vmem:[#allocation2 + $0x1b8] sm:$0xff]  ;;  %v185_v60 = vld [vmem:[#allocation2 + $0x2e8] sm:$0xff] }
 0x11c   :  { %246 = vmatmul.f32.gmra.mxu1 %v532_v61  ;;  %v388_v61 = vld [vmem:[#allocation2 + $0x1b0] sm:$0xff]  ;;  %422 = vmatpush.msra.mxu3 %v389_v59  ;;  %v296_v59 = vld [vmem:[#allocation2 + $0x358] sm:$0xff] }
 0x11d   :  { %533 = vtanh.f32 %v138_v62 }
 0x11e   :  { %423 = vmatpush.msra.mxu3 %v388_v61 }
 0x123   :  { %v534_v63 = vpop.eup %533 }
 0x124   :  { %249 = vmatmul.f32.gmra.mxu1 %v534_v63 }
 0x129   :  { %v205_v1 = vpop.f32.mrf.mxu1 }
 0x12a   :  { %v206_v2 = vadd.f32 %v205_v1, %v172_v0  ;;  %v387_v1 = vld [vmem:[#allocation2 + $0x1a8] sm:$0xff] }
 0x12b   :  { %424 = vmatpush.msra.mxu3 %v387_v1 }
 0x12c   :  { %535 = vtanh.f32 %v206_v2  ;;  %v386_v2 = vld [vmem:[#allocation2 + $0x1a0] sm:$0xff] }
 0x12d   :  { %425 = vmatpush.msra.mxu3 %v386_v2 }
 0x131   :  { %v208_v4 = vpop.f32.mrf.mxu1 }
 0x132   :  { %v536_v5 = vpop.eup %535  ;;  %v209_v6 = vadd.f32 %v208_v4, %v173_v3  ;;  %v186_v3 = vld [vmem:[#allocation2 + $0x2f0] sm:$0xff]  ;;  %v385_v4 = vld [vmem:[#allocation2 + $0x198] sm:$0xff] }
 0x133   :  { %317 = vmatmul.f32.vlgmr.msra.gmra.mxu2 %v536_v5  ;;  %426 = vmatpush.msra.mxu3 %v385_v4 }
 0x134   :  { %537 = vtanh.f32 %v209_v6  ;;  %v384_v6 = vld [vmem:[#allocation2 + $0x190] sm:$0xff] }
 0x135   :  { %427 = vmatpush.msra.mxu3 %v384_v6 }
 0x139   :  { %v211_v8 = vpop.f32.mrf.mxu1 }
 0x13a   :  { %v538_v9 = vpop.eup %537  ;;  %v212_v10 = vadd.f32 %v211_v8, %v174_v7 }
 0x13b   :  { %320 = vmatmul.f32.gmra.mxu2 %v538_v9  ;;  %v383_v9 = vld [vmem:[#allocation2 + $0x188] sm:$0xff] }
 0x13c   :  { %539 = vtanh.f32 %v212_v10  ;;  %428 = vmatpush.msra.mxu3 %v383_v9  ;;  %v382_v10 = vld [vmem:[#allocation2 + $0x180] sm:$0xff] }
 0x13e   :  { %429 = vmatpush.msra.mxu3 %v382_v10 }
 0x141   :  { %v214_v12 = vpop.f32.mrf.mxu1 }
 0x142   :  { %v540_v13 = vpop.eup %539  ;;  %v215_v14 = vadd.f32 %v214_v12, %v175_v11  ;;  %v187_v11 = vld [vmem:[#allocation2 + $0x2f8] sm:$0xff] }
 0x143   :  { %323 = vmatmul.f32.gmra.mxu2 %v540_v13 }
 0x144   :  { %541 = vtanh.f32 %v215_v14 }
 0x149   :  { %v217_v16 = vpop.f32.mrf.mxu1 }
 0x14a   :  { %v542_v17 = vpop.eup %541  ;;  %v218_v18 = vadd.f32 %v217_v16, %v176_v15  ;;  %v285_v16 = vld [vmem:[#allocation2 + $0x300] sm:$0xff] }
 0x14b   :  { %326 = vmatmul.f32.gmra.mxu2 %v542_v17 }
 0x14c   :  { %543 = vtanh.f32 %v218_v18 }
 0x151   :  { %v220_v20 = vpop.f32.mrf.mxu1 }
 0x152   :  { %v544_v21 = vpop.eup %543  ;;  %v221_v22 = vadd.f32 %v220_v20, %v177_v19  ;;  %v286_v19 = vld [vmem:[#allocation2 + $0x308] sm:$0xff] }
 0x153   :  { %329 = vmatmul.f32.gmra.mxu2 %v544_v21 }
 0x154   :  { %545 = vtanh.f32 %v221_v22 }
 0x159   :  { %v223_v24 = vpop.f32.mrf.mxu1 }
 0x15a   :  { %v546_v25 = vpop.eup %545  ;;  %v224_v26 = vadd.f32 %v223_v24, %v178_v23  ;;  %v287_v23 = vld [vmem:[#allocation2 + $0x310] sm:$0xff] }
 0x15b   :  { %332 = vmatmul.f32.gmra.mxu2 %v546_v25 }
 0x15c   :  { %547 = vtanh.f32 %v224_v26 }
 0x161   :  { %v226_v28 = vpop.f32.mrf.mxu1 }
 0x162   :  { %v548_v29 = vpop.eup %547  ;;  %v227_v30 = vadd.f32 %v226_v28, %v179_v27  ;;  %v288_v27 = vld [vmem:[#allocation2 + $0x318] sm:$0xff] }
 0x163   :  { %335 = vmatmul.f32.gmra.mxu2 %v548_v29 }
 0x164   :  { %549 = vtanh.f32 %v227_v30 }
 0x169   :  { %v229_v32 = vpop.f32.mrf.mxu1 }
 0x16a   :  { %v550_v33 = vpop.eup %549  ;;  %v230_v34 = vadd.f32 %v229_v32, %v180_v31  ;;  %v289_v31 = vld [vmem:[#allocation2 + $0x320] sm:$0xff] }
 0x16b   :  { %338 = vmatmul.f32.gmra.mxu2 %v550_v33 }
 0x16c   :  { %551 = vtanh.f32 %v230_v34 }
 0x171   :  { %v232_v36 = vpop.f32.mrf.mxu1 }
 0x172   :  { %v552_v37 = vpop.eup %551  ;;  %v233_v38 = vadd.f32 %v232_v36, %v181_v35  ;;  %v290_v35 = vld [vmem:[#allocation2 + $0x328] sm:$0xff] }
 0x173   :  { %341 = vmatmul.f32.gmra.mxu2 %v552_v37 }
 0x174   :  { %553 = vtanh.f32 %v233_v38 }
 0x179   :  { %v235_v40 = vpop.f32.mrf.mxu1 }
 0x17a   :  { %v554_v41 = vpop.eup %553  ;;  %v236_v42 = vadd.f32 %v235_v40, %v182_v39  ;;  %v291_v39 = vld [vmem:[#allocation2 + $0x330] sm:$0xff] }
 0x17b   :  { %344 = vmatmul.f32.gmra.mxu2 %v554_v41 }
 0x17c   :  { %555 = vtanh.f32 %v236_v42 }
 0x181   :  { %v238_v45 = vpop.f32.mrf.mxu1 }
 0x182   :  { %v556_v46 = vpop.eup %555  ;;  %v239_v47 = vadd.f32 %v238_v45, %v183_v43  ;;  %v292_v43 = vld [vmem:[#allocation2 + $0x338] sm:$0xff] }
 0x183   :  { %347 = vmatmul.f32.gmra.mxu2 %v556_v46 }
 0x184   :  { %557 = vtanh.f32 %v239_v47  ;;  %v293_v47 = vld [vmem:[#allocation2 + $0x340] sm:$0xff] }
 0x189   :  { %v241_v53 = vpop.f32.mrf.mxu1 }
 0x18a   :  { %v558_v54 = vpop.eup %557  ;;  %v242_v55 = vadd.f32 %v241_v53, %v184_v52 }
 0x18b   :  { %350 = vmatmul.f32.gmra.mxu2 %v558_v54 }
 0x18c   :  { %559 = vtanh.f32 %v242_v55  ;;  %v295_v55 = vld [vmem:[#allocation2 + $0x350] sm:$0xff] }
 0x191   :  { %v244_v62 = vpop.f32.mrf.mxu1 }
 0x192   :  { %v560_v63 = vpop.eup %559  ;;  %v245_v0 = vadd.f32 %v244_v62, %v185_v60 }
 0x193   :  { %353 = vmatmul.f32.gmra.mxu2 %v560_v63  ;;  %v297_v63 = vld [vmem:[#allocation2 + $0x360] sm:$0xff] }
 0x194   :  { %561 = vtanh.f32 %v245_v0 }
 0x199   :  { %v247_v5 = vpop.f32.mrf.mxu1 }
 0x19a   :  { %v562_v7 = vpop.eup %561  ;;  %v248_v8 = vadd.f32 %v247_v5, %v186_v3  ;;  %v298_v3 = vld [vmem:[#allocation2 + $0x368] sm:$0xff] }
 0x19b   :  { %356 = vmatmul.f32.gmra.mxu2 %v562_v7  ;;  %v299_v7 = vld [vmem:[#allocation2 + $0x370] sm:$0xff] }
 0x19c   :  { %563 = vtanh.f32 %v248_v8 }
 0x1a1   :  { %v250_v12 = vpop.f32.mrf.mxu1 }
 0x1a2   :  { %v564_v13 = vpop.eup %563  ;;  %v251_v14 = vadd.f32 %v250_v12, %v187_v11  ;;  %v300_v11 = vld [vmem:[#allocation2 + $0x378] sm:$0xff] }
 0x1a3   :  { %359 = vmatmul.f32.gmra.mxu2 %v564_v13 }
 0x1a4   :  { %565 = vtanh.f32 %v251_v14 }
 0x1aa   :  { %v566_v15 = vpop.eup %565 }
 0x1ab   :  { %362 = vmatmul.f32.gmra.mxu2 %v566_v15 }
 0x1b6   :  { %v318_v17 = vpop.f32.mrf.mxu2 }
 0x1b7   :  { %v319_v18 = vadd.f32 %v318_v17, %v285_v16  ;;  %v398_v16 = vld [vmem:[#allocation2 + $0x380] sm:$0xff] }
 0x1b9   :  { %567 = vtanh.f32 %v319_v18 }
 0x1be   :  { %v321_v20 = vpop.f32.mrf.mxu2 }
 0x1bf   :  { %v568_v21 = vpop.eup %567  ;;  %v322_v22 = vadd.f32 %v321_v20, %v286_v19  ;;  %v399_v19 = vld [vmem:[#allocation2 + $0x388] sm:$0xff] }
 0x1c0   :  { %430 = vmatmul.f32.vlgmr.msra.gmra.mxu3 %v568_v21 }
 0x1c1   :  { %569 = vtanh.f32 %v322_v22  ;;  %v400_v22 = vld [vmem:[#allocation2 + $0x390] sm:$0xff] }
 0x1c6   :  { %v324_v24 = vpop.f32.mrf.mxu2 }
 0x1c7   :  { %v570_v25 = vpop.eup %569  ;;  %v325_v26 = vadd.f32 %v324_v24, %v287_v23 }
 0x1c8   :  { %433 = vmatmul.f32.gmra.mxu3 %v570_v25  ;;  %v401_v25 = vld [vmem:[#allocation2 + $0x398] sm:$0xff] }
 0x1c9   :  { %571 = vtanh.f32 %v325_v26 }
 0x1ce   :  { %v327_v28 = vpop.f32.mrf.mxu2 }
 0x1cf   :  { %v572_v29 = vpop.eup %571  ;;  %v328_v30 = vadd.f32 %v327_v28, %v288_v27  ;;  %v402_v28 = vld [vmem:[#allocation2 + $0x3a0] sm:$0xff] }
 0x1d0   :  { %436 = vmatmul.f32.gmra.mxu3 %v572_v29 }
 0x1d1   :  { %573 = vtanh.f32 %v328_v30 }
 0x1d6   :  { %v330_v32 = vpop.f32.mrf.mxu2 }
 0x1d7   :  { %v574_v33 = vpop.eup %573  ;;  %v331_v34 = vadd.f32 %v330_v32, %v289_v31  ;;  %v403_v31 = vld [vmem:[#allocation2 + $0x3a8] sm:$0xff] }
 0x1d8   :  { %439 = vmatmul.f32.gmra.mxu3 %v574_v33 }
 0x1d9   :  { %575 = vtanh.f32 %v331_v34  ;;  %v404_v34 = vld [vmem:[#allocation2 + $0x3b0] sm:$0xff] }
 0x1de   :  { %v333_v36 = vpop.f32.mrf.mxu2 }
 0x1df   :  { %v576_v37 = vpop.eup %575  ;;  %v334_v38 = vadd.f32 %v333_v36, %v290_v35 }
 0x1e0   :  { %442 = vmatmul.f32.gmra.mxu3 %v576_v37  ;;  %v405_v37 = vld [vmem:[#allocation2 + $0x3b8] sm:$0xff] }
 0x1e1   :  { %577 = vtanh.f32 %v334_v38 }
 0x1e6   :  { %v336_v40 = vpop.f32.mrf.mxu2 }
 0x1e7   :  { %v578_v41 = vpop.eup %577  ;;  %v337_v42 = vadd.f32 %v336_v40, %v291_v39  ;;  %v406_v40 = vld [vmem:[#allocation2 + $0x3c0] sm:$0xff] }
 0x1e8   :  { %445 = vmatmul.f32.gmra.mxu3 %v578_v41 }
 0x1e9   :  { %579 = vtanh.f32 %v337_v42 }
 0x1ee   :  { %v339_v44 = vpop.f32.mrf.mxu2 }
 0x1ef   :  { %v580_v45 = vpop.eup %579  ;;  %v340_v46 = vadd.f32 %v339_v44, %v292_v43  ;;  %v407_v43 = vld [vmem:[#allocation2 + $0x3c8] sm:$0xff] }
 0x1f0   :  { %448 = vmatmul.f32.gmra.mxu3 %v580_v45 }
 0x1f1   :  { %581 = vtanh.f32 %v340_v46  ;;  %v408_v46 = vld [vmem:[#allocation2 + $0x3d0] sm:$0xff] }
 0x1f6   :  { %v342_v48 = vpop.f32.mrf.mxu2 }
 0x1f7   :  { %v582_v49 = vpop.eup %581  ;;  %v343_v50 = vadd.f32 %v342_v48, %v293_v47 }
 0x1f8   :  { %451 = vmatmul.f32.gmra.mxu3 %v582_v49  ;;  %v409_v49 = vld [vmem:[#allocation2 + $0x3d8] sm:$0xff] }
 0x1f9   :  { %583 = vtanh.f32 %v343_v50 }
 0x1fe   :  { %v345_v52 = vpop.f32.mrf.mxu2 }
 0x1ff   :  { %v584_v53 = vpop.eup %583  ;;  %v346_v54 = vadd.f32 %v345_v52, %v294_v51  ;;  %v410_v52 = vld [vmem:[#allocation2 + $0x3e0] sm:$0xff] }
 0x200   :  { %454 = vmatmul.f32.gmra.mxu3 %v584_v53 }
 0x201   :  { %585 = vtanh.f32 %v346_v54 }
 0x206   :  { %v348_v56 = vpop.f32.mrf.mxu2 }
 0x207   :  { %v586_v57 = vpop.eup %585  ;;  %v349_v58 = vadd.f32 %v348_v56, %v295_v55  ;;  %v411_v55 = vld [vmem:[#allocation2 + $0x3e8] sm:$0xff] }
 0x208   :  { %457 = vmatmul.f32.gmra.mxu3 %v586_v57 }
 0x209   :  { %587 = vtanh.f32 %v349_v58  ;;  %v412_v58 = vld [vmem:[#allocation2 + $0x3f0] sm:$0xff] }
 0x20e   :  { %v351_v60 = vpop.f32.mrf.mxu2 }
 0x20f   :  { %v588_v61 = vpop.eup %587  ;;  %v352_v62 = vadd.f32 %v351_v60, %v296_v59 }
 0x210   :  { %460 = vmatmul.f32.gmra.mxu3 %v588_v61  ;;  %v413_v61 = vld [vmem:[#allocation2 + $0x3f8] sm:$0xff] }
 0x211   :  { %589 = vtanh.f32 %v352_v62 }
 0x216   :  { %v354_v0 = vpop.f32.mrf.mxu2 }
 0x217   :  { %v590_v1 = vpop.eup %589  ;;  %v355_v2 = vadd.f32 %v354_v0, %v297_v63 }
 0x218   :  { %463 = vmatmul.f32.gmra.mxu3 %v590_v1 }
 0x219   :  { %591 = vtanh.f32 %v355_v2 }
 0x21e   :  { %v357_v4 = vpop.f32.mrf.mxu2 }
 0x21f   :  { %v592_v5 = vpop.eup %591  ;;  %v358_v6 = vadd.f32 %v357_v4, %v298_v3 }
 0x220   :  { %466 = vmatmul.f32.gmra.mxu3 %v592_v5 }
 0x221   :  { %593 = vtanh.f32 %v358_v6 }
 0x226   :  { %v360_v8 = vpop.f32.mrf.mxu2 }
 0x227   :  { %v594_v9 = vpop.eup %593  ;;  %v361_v10 = vadd.f32 %v360_v8, %v299_v7 }
 0x228   :  { %469 = vmatmul.f32.gmra.mxu3 %v594_v9 }
 0x229   :  { %595 = vtanh.f32 %v361_v10 }
 0x22e   :  { %v363_v12 = vpop.f32.mrf.mxu2 }
 0x22f   :  { %v596_v13 = vpop.eup %595  ;;  %v364_v14 = vadd.f32 %v363_v12, %v300_v11 }
 0x230   :  { %472 = vmatmul.f32.gmra.mxu3 %v596_v13 }
 0x231   :  { %597 = vtanh.f32 %v364_v14 }
 0x237   :  { %v598_v15 = vpop.eup %597 }
 0x238   :  { %475 = vmatmul.f32.gmra.mxu3 %v598_v15 }
 0x243   :  { %v431_v17 = vpop.f32.mrf.mxu3 }
 0x244   :  { %v432_v18 = vadd.f32 %v431_v17, %v398_v16 }
 0x246   :  { %479 = vst [vmem:[%s744_s2] sm:$0xff] %v432_v18 }
 0x24b   :  { %v434_v20 = vpop.f32.mrf.mxu3 }
 0x24c   :  { %v435_v21 = vadd.f32 %v434_v20, %v399_v19 }
 0x24e   :  { %480 = vst [vmem:[%s744_s2 + $0x8] sm:$0xff] %v435_v21 }
 0x253   :  { %v437_v23 = vpop.f32.mrf.mxu3 }
 0x254   :  { %v438_v24 = vadd.f32 %v437_v23, %v400_v22 }
 0x256   :  { %481 = vst [vmem:[%s744_s2 + $0x10] sm:$0xff] %v438_v24 }
 0x25b   :  { %v440_v26 = vpop.f32.mrf.mxu3 }
 0x25c   :  { %v441_v27 = vadd.f32 %v440_v26, %v401_v25 }
 0x25e   :  { %482 = vst [vmem:[%s744_s2 + $0x18] sm:$0xff] %v441_v27 }
 0x263   :  { %v443_v29 = vpop.f32.mrf.mxu3 }
 0x264   :  { %v444_v30 = vadd.f32 %v443_v29, %v402_v28 }
 0x266   :  { %483 = vst [vmem:[%s744_s2 + $0x20] sm:$0xff] %v444_v30 }
 0x26b   :  { %v446_v32 = vpop.f32.mrf.mxu3 }
 0x26c   :  { %v447_v33 = vadd.f32 %v446_v32, %v403_v31 }
 0x26e   :  { %484 = vst [vmem:[%s744_s2 + $0x28] sm:$0xff] %v447_v33 }
 0x273   :  { %v449_v35 = vpop.f32.mrf.mxu3 }
 0x274   :  { %v450_v36 = vadd.f32 %v449_v35, %v404_v34 }
 0x276   :  { %485 = vst [vmem:[%s744_s2 + $0x30] sm:$0xff] %v450_v36 }
 0x27b   :  { %v452_v38 = vpop.f32.mrf.mxu3 }
 0x27c   :  { %v453_v39 = vadd.f32 %v452_v38, %v405_v37 }
 0x27e   :  { %486 = vst [vmem:[%s744_s2 + $0x38] sm:$0xff] %v453_v39 }
 0x283   :  { %v455_v41 = vpop.f32.mrf.mxu3 }
 0x284   :  { %v456_v42 = vadd.f32 %v455_v41, %v406_v40 }
 0x286   :  { %487 = vst [vmem:[%s744_s2 + $0x40] sm:$0xff] %v456_v42 }
 0x28b   :  { %v458_v44 = vpop.f32.mrf.mxu3 }
 0x28c   :  { %v459_v45 = vadd.f32 %v458_v44, %v407_v43 }
 0x28e   :  { %488 = vst [vmem:[%s744_s2 + $0x48] sm:$0xff] %v459_v45 }
 0x293   :  { %v461_v47 = vpop.f32.mrf.mxu3 }
 0x294   :  { %v462_v48 = vadd.f32 %v461_v47, %v408_v46 }
 0x296   :  { %489 = vst [vmem:[%s744_s2 + $0x50] sm:$0xff] %v462_v48 }
 0x29b   :  { %v464_v50 = vpop.f32.mrf.mxu3 }
 0x29c   :  { %v465_v51 = vadd.f32 %v464_v50, %v409_v49 }
 0x29e   :  { %490 = vst [vmem:[%s744_s2 + $0x58] sm:$0xff] %v465_v51 }
 0x2a3   :  { %v467_v53 = vpop.f32.mrf.mxu3 }
 0x2a4   :  { %v468_v54 = vadd.f32 %v467_v53, %v410_v52 }
 0x2a6   :  { %491 = vst [vmem:[%s744_s2 + $0x60] sm:$0xff] %v468_v54 }
 0x2ab   :  { %v470_v56 = vpop.f32.mrf.mxu3 }
 0x2ac   :  { %v471_v57 = vadd.f32 %v470_v56, %v411_v55 }
 0x2ae   :  { %492 = vst [vmem:[%s744_s2 + $0x68] sm:$0xff] %v471_v57 }
 0x2b3   :  { %v473_v59 = vpop.f32.mrf.mxu3 }
 0x2b4   :  { %v474_v60 = vadd.f32 %v473_v59, %v412_v58 }
 0x2b6   :  { %493 = vst [vmem:[%s744_s2 + $0x70] sm:$0xff] %v474_v60 }
 0x2bb   :  { %v476_v62 = vpop.f32.mrf.mxu3 }
 0x2bc   :  { %v477_v63 = vadd.f32 %v476_v62, %v413_v61 }
 0x2be   :  { %494 = vst [vmem:[%s744_s2 + $0x78] sm:$0xff] %v477_v63 }
 0x2bf   :  { %499 = vsyncpa [#allocation3], 1 }

</bundles_post_ra>
